<compile_context>
chip_gen: v7x
topology: tpu7x:2x2x1
jax: 0.10.0
libtpu: 0.0.40
codegen_flags: <defaults>
</compile_context>

<pallas_src>
import jax
import jax.numpy as jnp
from jax.experimental import pallas as pl
from jax.experimental.pallas import tpu as pltpu


def autopad(k, p=None):
    if p is None:
        p = k // 2 if isinstance(k, int) else [x // 2 for x in k]
    return p


def _round_up(x, m):
    return ((x + m - 1) // m) * m


def _conv_bn_silu_kernel(p_ref, w_ref, b_ref, o_ref):
    """One (TILE_M, TILE_N) output tile.

    p_ref: (TILE_M, K)      im2col patches, native input dtype
    w_ref: (K, TILE_N)      conv weight with BN scale folded in
    b_ref: (1, TILE_N)      folded BN bias (f32)
    o_ref: (TILE_M, TILE_N) output tile
    """
    # Single MXU matmul per tile, f32 accumulation (no f32 input copy).
    acc = jnp.dot(p_ref[...], w_ref[...], preferred_element_type=jnp.float32)
    # Folded-BN bias + SiLU epilogue, kept in f32 (v5e-safe), cast at store.
    y = acc + b_ref[...]
    y = y * jax.nn.sigmoid(y)
    o_ref[...] = y.astype(o_ref.dtype)


def conv_bn_silu(x_nchw, weight_oihw, gamma, beta, running_mean, running_var,
                 k=3, s=1, p=None, eps=1e-5, tile_m=256, tile_n=None):
    """Wrapper: NCHW in / NCHW out, matching PyTorch Conv.forward (eval BN)."""
    # TODO(synk): groups (g > 1 / depthwise) not implemented; module default g=1.
    p = autopad(k, p)
    B, C1, H, W = x_nchw.shape
    C2 = weight_oihw.shape[0]
    KH = KW = k
    Ho = (H + 2 * p - k) // s + 1
    Wo = (W + 2 * p - k) // s + 1

    # ---- glue: layout transforms + im2col (plain JAX, outside the kernel) ----
    # TODO(synk): for production, keep activations NHWC across layers and fuse
    # patch extraction into the kernel via pl.Element halo blocks / manual DMA
    # to avoid the KH*KW HBM blowup; here it is wrapper glue for a drop-in op.
    x_nhwc = jnp.transpose(x_nchw, (0, 2, 3, 1))
    x_pad = jnp.pad(x_nhwc, ((0, 0), (p, p), (p, p), (0, 0)))
    taps = []
    for kh in range(KH):
        for kw in range(KW):
            taps.append(x_pad[:, kh:kh + (Ho - 1) * s + 1:s,
                                 kw:kw + (Wo - 1) * s + 1:s, :])
    patches = jnp.concatenate(taps, axis=-1)            # (B, Ho, Wo, KH*KW*C1)
    K = KH * KW * C1
    M = B * Ho * Wo
    patches = patches.reshape(M, K)

    # Fold BN (eval mode): scale goes into the weight, bias stays for epilogue.
    scale = gamma / jnp.sqrt(running_var + eps)                     # (C2,)
    bias = beta - running_mean * scale                              # (C2,)
    w2d = jnp.transpose(weight_oihw, (2, 3, 1, 0)).reshape(K, C2)   # (K, C2)
    w2d = (w2d.astype(jnp.float32) * scale[None, :]).astype(x_nchw.dtype)

    # Pad for aligned, lane-dense tiles: N multiple of 128, M multiple of tile_m.
    C2p = _round_up(C2, 128)
    if tile_n is None:
        tile_n = 256 if C2p % 256 == 0 else 128   # 128 also fine on v5e's MXU
    Mp = _round_up(M, tile_m)
    patches = jnp.pad(patches, ((0, Mp - M), (0, 0)))
    w2d = jnp.pad(w2d, ((0, 0), (0, C2p - C2)))
    bias = jnp.pad(bias, (0, C2p - C2)).reshape(1, C2p).astype(jnp.float32)

    grid = (Mp // tile_m, C2p // tile_n)

    out2d = pl.pallas_call(
        _conv_bn_silu_kernel,
        out_shape=jax.ShapeDtypeStruct((Mp, C2p), x_nchw.dtype),
        grid_spec=pltpu.PrefetchScalarGridSpec(
            num_scalar_prefetch=0,
            grid=grid,
            in_specs=[
                pl.BlockSpec((tile_m, K), lambda i, j: (i, 0)),   # patches
                pl.BlockSpec((K, tile_n), lambda i, j: (0, j)),   # weight
                pl.BlockSpec((1, tile_n), lambda i, j: (0, j)),   # bias
            ],
            out_specs=pl.BlockSpec((tile_m, tile_n), lambda i, j: (i, j)),
        ),
        compiler_params=pltpu.CompilerParams(
            # Both axes independent -> shard across v7x's two TensorCores.
            dimension_semantics=("parallel", "parallel"),
            # Tiles are small; stay well under v7x's 32 MiB default scoped VMEM.
            vmem_limit_bytes=32 * 1024 * 1024,
        ),
    )(patches, w2d, bias)

    out = out2d[:M, :C2].reshape(B, Ho, Wo, C2)
    return jnp.transpose(out, (0, 3, 1, 2))   # back to NCHW


def _reference(x_nchw, weight_oihw, gamma, beta, running_mean, running_var,
               k=3, s=1, p=None, eps=1e-5):
    """Plain-JAX reference for a sanity check."""
    p = autopad(k, p)
    y = jax.lax.conv_general_dilated(
        x_nchw.astype(jnp.float32), weight_oihw.astype(jnp.float32),
        window_strides=(s, s), padding=((p, p), (p, p)),
        dimension_numbers=("NCHW", "OIHW", "NCHW"))
    scale = (gamma / jnp.sqrt(running_var + eps)).reshape(1, -1, 1, 1)
    bias = (beta - running_mean * gamma / jnp.sqrt(running_var + eps)
            ).reshape(1, -1, 1, 1)
    y = y * scale + bias
    return y * jax.nn.sigmoid(y)


if __name__ == "__main__":
    # Small shapes consistent with the module: Conv(c1=4, c2=8, k=3, s=1)
    B, C1, H, W = 2, 4, 16, 16
    C2, K, S = 8, 3, 1

    key = jax.random.PRNGKey(0)
    k_x, k_w, k_g, k_b, k_m, k_v = jax.random.split(key, 6)

    x = jax.random.normal(k_x, (B, C1, H, W), dtype=jnp.float32)
    weight = jax.random.normal(k_w, (C2, C1, K, K), dtype=jnp.float32) * 0.1
    gamma = 1.0 + 0.1 * jax.random.normal(k_g, (C2,), dtype=jnp.float32)
    beta = 0.1 * jax.random.normal(k_b, (C2,), dtype=jnp.float32)
    running_mean = 0.1 * jax.random.normal(k_m, (C2,), dtype=jnp.float32)
    running_var = jnp.abs(jax.random.normal(k_v, (C2,), dtype=jnp.float32)) + 0.5

    out = conv_bn_silu(x, weight, gamma, beta, running_mean, running_var,
                       k=K, s=S)
    out = jax.block_until_ready(out)

    ref = _reference(x, weight, gamma, beta, running_mean, running_var,
                     k=K, s=S)
    assert out.shape == (B, C2, H, W), out.shape
    assert jnp.allclose(out, ref, atol=1e-4, rtol=1e-4), \
        float(jnp.max(jnp.abs(out - ref)))

    print("KERNEL_OK")
</pallas_src>

<mosaic_0001>
module attributes {stable_mosaic.version = 11 : i64} {
  func.func @_conv_bn_silu_kernel(%arg0: i32, %arg1: i32, %arg2: memref<256x36xf32, #tpu.memory_space<vmem>>, %arg3: memref<36x128xf32, #tpu.memory_space<vmem>>, %arg4: memref<1x128xf32, #tpu.memory_space<vmem>>, %arg5: memref<256x128xf32, #tpu.memory_space<vmem>>) attributes {dimension_semantics = [#tpu.dimension_semantics<parallel>, #tpu.dimension_semantics<parallel>], iteration_bounds = array<i64: 2, 1>, scalar_prefetch = 0 : i64, scratch_operands = 0 : i64, tpu.core_type = #tpu.core_type<tc>, window_params = [{transform_indices = @transform_0, window_bounds = array<i64: 256, 36>}, {transform_indices = @transform_1, window_bounds = array<i64: 36, 128>}, {transform_indices = @transform_2, window_bounds = array<i64: 1, 128>}, {transform_indices = @transform_3, window_bounds = array<i64: 256, 128>}]} {
    %c0 = arith.constant 0 : index
    %c0_0 = arith.constant 0 : index
    %0 = vector.load %arg2[%c0, %c0_0] : memref<256x36xf32, #tpu.memory_space<vmem>>, vector<256x36xf32>
    %c0_1 = arith.constant 0 : index
    %c0_2 = arith.constant 0 : index
    %1 = vector.load %arg3[%c0_1, %c0_2] : memref<36x128xf32, #tpu.memory_space<vmem>>, vector<36x128xf32>
    %cst = arith.constant dense<0.000000e+00> : vector<256x128xf32>
    %2 = tpu.matmul %0, %1, %cst {dimension_numbers = #tpu.dot_dimension_numbers<[1], [0], [0], [1], [0, 0, 1, 1], [], []>} : vector<256x36xf32>, vector<36x128xf32>, vector<256x128xf32> -> vector<256x128xf32>
    %c0_3 = arith.constant 0 : index
    %c0_4 = arith.constant 0 : index
    %3 = vector.load %arg4[%c0_3, %c0_4] : memref<1x128xf32, #tpu.memory_space<vmem>>, vector<1x128xf32>
    %4 = vector.broadcast %3 : vector<1x128xf32> to vector<256x128xf32>
    %5 = arith.addf %2, %4 : vector<256x128xf32>
    %6 = arith.negf %5 : vector<256x128xf32>
    %7 = math.exp %6 : vector<256x128xf32>
    %cst_5 = arith.constant 1.000000e+00 : f32
    %8 = vector.broadcast %cst_5 : f32 to vector<256x128xf32>
    %9 = arith.addf %8, %7 : vector<256x128xf32>
    %10 = arith.divf %8, %9 : vector<256x128xf32>
    %11 = arith.mulf %5, %10 : vector<256x128xf32>
    %c0_6 = arith.constant 0 : index
    %c0_7 = arith.constant 0 : index
    %12 = vector.load %arg5[%c0_6, %c0_7] : memref<256x128xf32, #tpu.memory_space<vmem>>, vector<256x128xf32>
    tpu.vector_store %arg5[%c0_6, %c0_7], %11 {strides = array<i32>} : memref<256x128xf32, #tpu.memory_space<vmem>>, vector<256x128xf32>,
    return
  }
  func.func @transform_0(%arg0: i32, %arg1: i32) -> (i32, i32) {
    %c0_i32 = arith.constant 0 : i32
    %c0_i32_0 = arith.constant 0 : i32
    return %arg0, %c0_i32 : i32, i32
  }
  func.func @transform_1(%arg0: i32, %arg1: i32) -> (i32, i32) {
    %c0_i32 = arith.constant 0 : i32
    %c0_i32_0 = arith.constant 0 : i32
    return %c0_i32, %arg1 : i32, i32
  }
  func.func @transform_2(%arg0: i32, %arg1: i32) -> (i32, i32) {
    %c0_i32 = arith.constant 0 : i32
    %c0_i32_0 = arith.constant 0 : i32
    return %c0_i32, %arg1 : i32, i32
  }
  func.func @transform_3(%arg0: i32, %arg1: i32) -> (i32, i32) {
    %c0_i32 = arith.constant 0 : i32
    return %arg0, %arg1 : i32, i32
  }
}

</mosaic_0001>

<bundles_post_ra>
// kernel: tpu_custom_call.1
= control target key start
LH: loop header
LB: loop body
LE: loop exit
PB: predicated region body
PF: predicated region fallthrough
CT: control target
= control target key end

     0   :  { %8 = vsyncpa [#allocation3], 0  ;;  %s1866_s0 = inlined_call_operand.vmem [shape: f32[512,36], index: 0, kind: input, shape index: {}]   ;;  %s1867_s1 = inlined_call_operand.vmem [shape: f32[36,128], index: 1, kind: input, shape index: {}]   ;;  %s1868_s2 = inlined_call_operand.vmem [shape: f32[1,128], index: 2, kind: input, shape index: {}]   ;;  %s1869_s3 = inlined_call_operand.hbm [shape: f32[512,128], index: 3, kind: output, shape index: {}]  }
   0x1   :  { %10 = vsyncpa [#allocation3 + $0x1], 0  ;;  %s1436_s12 = smov 0   ;;  %s1438_s13 = smov 0  }
   0x2   :  { %s1440_s14 = smov 0   ;;  %s1442_s15 = smov 0  }
   0x3   :  { %s1444_s16 = smov 0   ;;  %s1446_s17 = smov 0  }
   0x4 LB: > { %s957_s18 = sadd.s32 4294967295, %s1411_s17   ;;  %s958_s19 = sadd.s32 4294967294, %s1411_s17   ;;  %s1411_s17 = sphi %s1446_s17, %s16_s17   ;;  %s1407_s16 = sphi %s1444_s16, %s1876_s16   ;;  %s1403_s15 = sphi %s1442_s15, %s1875_s15   ;;  %s1399_s14 = sphi %s1440_s14, %s1874_s14   ;;  %s1395_s13 = sphi %s1438_s13, %s1873_s13   ;;  %s1391_s12 = sphi %s1436_s12, %s1872_s12  }
   0x5   : > { %s28_s20 = sadd.s32 1, %s1407_s16  ;;  %s115_s21 = sadd.s32 1, %s1399_s14 }
   0x6   : > { %p30_p0 = scmp.ge.s32.totalorder %s28_s20, 2  ;;  %p125_p1 = scmp.ne.s32.totalorder %s1399_s14, %s1395_s13 }
   0x7   : > { %p126_p2 = scmp.eq.s32.totalorder %s957_s18, 1  ;;  %p131_p3 = scmp.ne.s32.totalorder %s1395_s13, %s1391_s12 }
   0x8   : > { %s1878_s20 = smov (%p30_p0, %s28_s20), 0  ;;  %p132_p5 = scmp.eq.s32.totalorder %s958_s19, 1 }
   0x9   : > { %p1476_p4 = por %p126_p2, %p125_p1  ;;  %s110_s23 = ssub.s32 %s1407_s16, %s1878_s20 }
   0xa   : > { %p963_p6 = scmp.ge.s32.totalorder %s1411_s17, 1  ;;  %p113_p7 = scmp.eq.s32.totalorder %s110_s23, 0 }
   0xb   : > { %p1483_p8 = por %p132_p5, %p131_p3  ;;  %p172_p9 = scmp.lt.s32.totalorder %s1411_s17, 3 }
   0xc   : > { %s1489_s25 = scalar_select %p113_p7, %s1399_s14, %s115_s21  }
   0xd   : > { %p173_p10 = pnand %p963_p6, %p172_p9 }
   0xe   : > { %v249_v0 = vld [vmem:[%s1867_s1] sm:$0xff] (!%p173_p10)  ;;  %v250_v1 = vld [vmem:[%s1867_s1 + $0x8] sm:$0xff] (!%p173_p10)  ;;  %v251_v2 = vld [vmem:[%s1867_s1 + $0x10] sm:$0xff] (!%p173_p10)  ;;  %s965_s5 = sshll.u32 (!%p173_p10), %s1403_s15, 5  ;;  %vm358_vm0 = vcmask (!%p173_p10), 1043456   ;;  %vm261_vm1 = vcmask (!%p173_p10), 293888  }
   0xf   : > { %176 = sbr.rel (%p173_p10) target bundleno = 342 (0x156), region = 32  ;;  %v1134_v3 = vpack.c.bf16 (!%p173_p10), %v250_v1, %v249_v0  ;;  %v252_v4 = vld [vmem:[%s1867_s1 + $0x18] sm:$0xff] (!%p173_p10)  ;;  %p204_p11 = scmp.lt.s32.totalorder (!%p173_p10), %s965_s5, 63  ;;  %v253_v6 = vld [vmem:[%s1867_s1 + $0x20] sm:$0xf] (!%p173_p10) }
  0x10   : > { %v1138_v5 = vpack.c.bf16 (!%p173_p10), %v252_v4, %v251_v2  ;;  %v1583_v39 = vld [vmem:[%s1868_s2] ss:$0 sm:$0xff] (!%p173_p10)  ;;  %s200_s26 = sand.u32 (!%p173_p10), 1, %s1395_s13   ;;  %s1038_s29 = sshll.u32 (!%p173_p10), %s1403_s15, 12 }
  0x11   : > { %1135 = vmatprep.subr.bf16.mxu0 (!%p173_p10), %v1134_v3  ;;  %1142 = vmatprep.subr.bf16.mxu1 (!%p173_p10), %v1134_v3  ;;  %s1650_s27 = sshll.u32 (!%p173_p10), %s200_s26, 8  ;;  %s1810_s15 = scalar_lea.hbm (!%p173_p10), %s1869_s3, %s1038_s29 }
  0x12   : > { %1137 = vmatpush3.bf16.msra.mxu0 (!%p173_p10), %v1134_v3  ;;  %1145 = vmatpush3.bf16.msra.mxu1 (!%p173_p10), %v1134_v3  ;;  %s1689_s28 = scalar_lea.vmem (!%p173_p10), [#allocation2], %s1650_s27  ;;  %s1820_s6 = scalar_lea.sflag (!%p173_p10), [#allocation3], %s200_s26 }
  0x13   : > { %1139 = vmatprep.subr.bf16.mxu0 (!%p173_p10), %v1138_v5  ;;  %1143 = vmatprep.subr.bf16.mxu1 (!%p173_p10), %v1138_v5  ;;  %s858_s30 = sshll.u32 (!%p173_p10), %s1689_s28, 4  ;;  %s1812_s30 = int_to_ptr.vmem [resolvable:$true] %s858_s30 }
  0x14   : > { %s1333_s7 = scalar_lea.vmem (!%p173_p10), %s1812_s30, 4096 }
  0x15   : > { %p1334_p12 = scmp.ne.s32.totalorder (!%p173_p10), %s1812_s30, %s1333_s7 }
  0x16   : > { %s1880_s5 = smov (!%p204_p11, %s965_s5), 63  ;;  %1141 = vmatpush3.bf16.msra.mxu0 %v1138_v5  ;;  %1146 = vmatpush3.bf16.msra.mxu1 %v1138_v5 }
  0x17   : > { %s966_s8 = sshll.u32 %s1880_s5, 3  ;;  %1084 = vmatprep.subr.msk.mxu0 %vm358_vm0, %v253_v6  ;;  %1144 = vmatprep.subr.msk.mxu1 %vm358_vm0, %v253_v6  ;;  %p1335_p13 = pnand %p1334_p12, %p1476_p4 }
  0x18   : > { %s1510_s19 = scalar_lea.vmem %s1866_s0, %s966_s8  ;;  %s1413_s8 = smov [#allocation2]  }
  0x19   : > { %v217_v7 = vld [vmem:[%s1510_s19] sm:$0xff]  ;;  %v218_v9 = vld [vmem:[%s1510_s19 + $0x8] sm:$0xff]  ;;  %v219_v11 = vld [vmem:[%s1510_s19 + $0x10] sm:$0xff]  ;;  %p1336_p0 = pneg %p1335_p13  ;;  %s1337_s9 = sshll.u32 %s1413_s8, 4  ;;  %s1338_s9 = int_to_ptr.vmem [resolvable:$false] %s1337_s9 }
  0x1a   : > { %v233_v8 = vld [vmem:[%s1510_s19 + $0x80] sm:$0xff]  ;;  %1086 = vmatprep.mubr.msk.f32.mxu0 %vm261_vm1, %v217_v7  ;;  %v234_v10 = vld [vmem:[%s1510_s19 + $0x88] sm:$0xff]  ;;  %v235_v12 = vld [vmem:[%s1510_s19 + $0x90] sm:$0xff]  ;;  %1085 = vmatpush3.msk.msra.mxu0 %vm358_vm0, %v253_v6  ;;  %s1339_s10 = scalar_lea.vmem %s1338_s9, 8192  ;;  %p1340_p1 = scmp.lt.s32.totalorder %s1812_s30, %s1338_s9 }
  0x1b   : > { %1110 = vmatprep.mubr.msk.f32.mxu1 %vm261_vm1, %v233_v8  ;;  %1147 = vmatpush3.msk.msra.mxu1 %vm358_vm0, %v253_v6  ;;  %v220_v13 = vld [vmem:[%s1510_s19 + $0x18] sm:$0xff]  ;;  %v221_v15 = vld [vmem:[%s1510_s19 + $0x20] sm:$0xff]  ;;  %v222_v17 = vld [vmem:[%s1510_s19 + $0x28] sm:$0xff]  ;;  %p1341_p2 = scmp.lt.s32.totalorder %s1339_s10, %s1333_s7 }
  0x1c   : > { %1087 = vmatmul.mubr.msk.f32.vlgmr.msra.gmra.mrb[0].mxu0 %vm261_vm1, %v218_v9  ;;  %1111 = vmatmul.mubr.msk.f32.vlgmr.msra.gmra.mrb[0].mxu1 %vm261_vm1, %v234_v10  ;;  %v236_v14 = vld [vmem:[%s1510_s19 + $0x98] sm:$0xff]  ;;  %v237_v16 = vld [vmem:[%s1510_s19 + $0xa0] sm:$0xff]  ;;  %v238_v18 = vld [vmem:[%s1510_s19 + $0xa8] sm:$0xff] }
  0x1d   : > { %1089 = vmatprep.mubr.msk.f32.mxu0 %vm261_vm1, %v219_v11  ;;  %1113 = vmatprep.mubr.msk.f32.mxu1 %vm261_vm1, %v235_v12  ;;  %v223_v19 = vld [vmem:[%s1510_s19 + $0x30] sm:$0xff]  ;;  %v224_v21 = vld [vmem:[%s1510_s19 + $0x38] sm:$0xff]  ;;  %v225_v23 = vld [vmem:[%s1510_s19 + $0x40] sm:$0xff]  ;;  %p1342_p3 = por %p1341_p2, %p1340_p1 }
  0x1e   : > { %v239_v20 = vld [vmem:[%s1510_s19 + $0xb0] sm:$0xff]  ;;  %v240_v22 = vld [vmem:[%s1510_s19 + $0xb8] sm:$0xff]  ;;  %v241_v24 = vld [vmem:[%s1510_s19 + $0xc0] sm:$0xff] }
  0x1f   : > { %v226_v25 = vld [vmem:[%s1510_s19 + $0x48] sm:$0xff]  ;;  %v227_v27 = vld [vmem:[%s1510_s19 + $0x50] sm:$0xff]  ;;  %v228_v29 = vld [vmem:[%s1510_s19 + $0x58] sm:$0xff]  ;;  %p1343_p5 = pnand %p1342_p3, %p1336_p0 }
  0x20   : > { %1090 = vmatmul.mubr.msk.f32.gmra.mrb[2].mxu0 %vm261_vm1, %v220_v13  ;;  %1114 = vmatmul.mubr.msk.f32.gmra.mrb[2].mxu1 %vm261_vm1, %v236_v14  ;;  %v242_v26 = vld [vmem:[%s1510_s19 + $0xc8] sm:$0xff]  ;;  %v243_v28 = vld [vmem:[%s1510_s19 + $0xd0] sm:$0xff]  ;;  %v244_v30 = vld [vmem:[%s1510_s19 + $0xd8] sm:$0xff] }
  0x21   : > { %1092 = vmatprep.mubr.msk.f32.mxu0 %vm261_vm1, %v221_v15  ;;  %1116 = vmatprep.mubr.msk.f32.mxu1 %vm261_vm1, %v237_v16  ;;  %v229_v31 = vld [vmem:[%s1510_s19 + $0x60] sm:$0xff]  ;;  %v230_v33 = vld [vmem:[%s1510_s19 + $0x68] sm:$0xff]  ;;  %v231_v35 = vld [vmem:[%s1510_s19 + $0x70] sm:$0xff] }
  0x22   : > { %v245_v32 = vld [vmem:[%s1510_s19 + $0xe0] sm:$0xff]  ;;  %v246_v34 = vld [vmem:[%s1510_s19 + $0xe8] sm:$0xff]  ;;  %v247_v36 = vld [vmem:[%s1510_s19 + $0xf0] sm:$0xff] }
  0x23   : > { %v232_v37 = vld [vmem:[%s1510_s19 + $0x78] sm:$0xff] }
  0x24   : > { %1093 = vmatmul.mubr.msk.f32.gmra.mrb[4].mxu0 %vm261_vm1, %v222_v17  ;;  %1117 = vmatmul.mubr.msk.f32.gmra.mrb[4].mxu1 %vm261_vm1, %v238_v18  ;;  %v248_v38 = vld [vmem:[%s1510_s19 + $0xf8] sm:$0xff] }
  0x25   : > { %1095 = vmatprep.mubr.msk.f32.mxu0 %vm261_vm1, %v223_v19  ;;  %1119 = vmatprep.mubr.msk.f32.mxu1 %vm261_vm1, %v239_v20 }
  0x28   : > { %1096 = vmatmul.mubr.msk.f32.gmra.mrb[6].mxu0 %vm261_vm1, %v224_v21  ;;  %1120 = vmatmul.mubr.msk.f32.gmra.mrb[6].mxu1 %vm261_vm1, %v240_v22 }
  0x29   : > { %1098 = vmatprep.mubr.msk.f32.mxu0 %vm261_vm1, %v225_v23  ;;  %1122 = vmatprep.mubr.msk.f32.mxu1 %vm261_vm1, %v241_v24 }
  0x2c   : > { %1099 = vmatmul.mubr.msk.f32.gmra.mrb[8].mxu0 %vm261_vm1, %v226_v25  ;;  %1123 = vmatmul.mubr.msk.f32.gmra.mrb[8].mxu1 %vm261_vm1, %v242_v26 }
  0x2d   : > { %1101 = vmatprep.mubr.msk.f32.mxu0 %vm261_vm1, %v227_v27  ;;  %1125 = vmatprep.mubr.msk.f32.mxu1 %vm261_vm1, %v243_v28 }
  0x30   : > { %1102 = vmatmul.mubr.msk.f32.gmra.mrb[10].mxu0 %vm261_vm1, %v228_v29  ;;  %1126 = vmatmul.mubr.msk.f32.gmra.mrb[10].mxu1 %vm261_vm1, %v244_v30 }
  0x31   : > { %1104 = vmatprep.mubr.msk.f32.mxu0 %vm261_vm1, %v229_v31  ;;  %1128 = vmatprep.mubr.msk.f32.mxu1 %vm261_vm1, %v245_v32 }
  0x34   : > { %1105 = vmatmul.mubr.msk.f32.gmra.mrb[12].mxu0 %vm261_vm1, %v230_v33  ;;  %1129 = vmatmul.mubr.msk.f32.gmra.mrb[12].mxu1 %vm261_vm1, %v246_v34 }
  0x35   : > { %1107 = vmatprep.mubr.msk.f32.mxu0 %vm261_vm1, %v231_v35  ;;  %1131 = vmatprep.mubr.msk.f32.mxu1 %vm261_vm1, %v247_v36 }
  0x38   : > { %1108 = vmatmul.mubr.msk.f32.gmra.mrb[14].mxu0 %vm261_vm1, %v232_v37  ;;  %1132 = vmatmul.mubr.msk.f32.gmra.mrb[14].mxu1 %vm261_vm1, %v248_v38 }
  0xef   : > { %v1088_v40 = vpop.f32.mrb[0].mxu0  ;;  %v1112_v41 = vpop.f32.mrb[0].mxu1 }
  0xf0   : > { %v1586_v42 = vadd.f32 %v1088_v40, %v1583_v39  ;;  %v1589_v43 = vadd.f32 %v1112_v41, %v1583_v39  ;;  %v428_v44 = vpop.f32.mrb[1].mxu0  ;;  %v508_v45 = vpop.f32.mrb[1].mxu1 }
  0xf1   : > { %v1592_v46 = vadd.f32 %v1583_v39, %v428_v44  ;;  %v1595_v47 = vadd.f32 %v1583_v39, %v508_v45 }
  0xf2   : > { %v1002_v48 = vmul.f32 -1.442695, %v1586_v42  ;;  %v1018_v49 = vmul.f32 -1.442695, %v1589_v43 }
  0xf3   : > { %v1001_v50 = vmul.f32 -1.442695, %v1592_v46  ;;  %v1017_v51 = vmul.f32 -1.442695, %v1595_v47  ;;  %v1091_v52 = vpop.f32.mrb[2].mxu0  ;;  %v1115_v53 = vpop.f32.mrb[2].mxu1 }
  0xf4   : > { %1205 = vpow2.f32 %v1002_v48  ;;  %v1602_v54 = vadd.f32 %v1091_v52, %v1583_v39  ;;  %v1605_v55 = vadd.f32 %v1115_v53, %v1583_v39  ;;  %v438_v56 = vpop.f32.mrb[3].mxu0  ;;  %v518_v57 = vpop.f32.mrb[3].mxu1 }
  0xf5   : > { %1207 = vpow2.f32 %v1018_v49  ;;  %v1608_v58 = vadd.f32 %v1583_v39, %v438_v56  ;;  %v1611_v59 = vadd.f32 %v1583_v39, %v518_v57 }
  0xf6   : > { %1209 = vpow2.f32 %v1001_v50  ;;  %v1004_v60 = vmul.f32 -1.442695, %v1602_v54  ;;  %v1020_v61 = vmul.f32 -1.442695, %v1605_v55 }
  0xf7   : > { %1211 = vpow2.f32 %v1017_v51  ;;  %v1003_v62 = vmul.f32 -1.442695, %v1608_v58  ;;  %v1019_v63 = vmul.f32 -1.442695, %v1611_v59  ;;  %v1094_v0 = vpop.f32.mrb[4].mxu0  ;;  %v1118_v1 = vpop.f32.mrb[4].mxu1 }
  0xf8   : > { %1213 = vpow2.f32 %v1004_v60  ;;  %v1618_v2 = vadd.f32 %v1094_v0, %v1583_v39  ;;  %v1621_v3 = vadd.f32 %v1118_v1, %v1583_v39  ;;  %v448_v4 = vpop.f32.mrb[5].mxu0  ;;  %v528_v5 = vpop.f32.mrb[5].mxu1 }
  0xf9   : > { %1215 = vpow2.f32 %v1020_v61  ;;  %v1624_v6 = vadd.f32 %v1583_v39, %v448_v4  ;;  %v1627_v7 = vadd.f32 %v1583_v39, %v528_v5 }
  0xfa   : > { %1217 = vpow2.f32 %v1003_v62  ;;  %v1006_v8 = vmul.f32 -1.442695, %v1618_v2  ;;  %v1022_v9 = vmul.f32 -1.442695, %v1621_v3 }
  0xfb   : > { %1219 = vpow2.f32 %v1019_v63  ;;  %v1005_v10 = vmul.f32 -1.442695, %v1624_v6  ;;  %v1021_v11 = vmul.f32 -1.442695, %v1627_v7  ;;  %v1097_v12 = vpop.f32.mrb[6].mxu0  ;;  %v1121_v13 = vpop.f32.mrb[6].mxu1 }
  0xfc   : > { %1221 = vpow2.f32 %v1006_v8  ;;  %v1634_v14 = vadd.f32 %v1097_v12, %v1583_v39  ;;  %v458_v15 = vpop.f32.mrb[7].mxu0  ;;  %v538_v16 = vpop.f32.mrb[7].mxu1  ;;  %v1643_v48 = vadd.f32 %v1121_v13, %v1583_v39 }
  0xfd   : > { %1223 = vpow2.f32 %v1022_v9  ;;  %v1646_v51 = vadd.f32 %v1583_v39, %v458_v15  ;;  %v1653_v57 = vadd.f32 %v1583_v39, %v538_v16 }
  0xfe   : > { %v1206_v17 = vpop.eup %1205  ;;  %1225 = vpow2.f32 %v1005_v10  ;;  %v1008_v18 = vmul.f32 -1.442695, %v1634_v14  ;;  %v1024_v8 = vmul.f32 -1.442695, %v1643_v48 }
  0xff   : > { %v1208_v19 = vpop.eup %1207  ;;  %v684_v20 = vadd.f32 1.0, %v1206_v17  ;;  %1227 = vpow2.f32 %v1021_v11  ;;  %v1100_v21 = vpop.f32.mrb[8].mxu0  ;;  %v1007_v12 = vmul.f32 -1.442695, %v1646_v51 }
 0x100   : > { %v1210_v22 = vpop.eup %1209  ;;  %v700_v23 = vadd.f32 1.0, %v1208_v19  ;;  %1229 = vpow2.f32 %v1008_v18  ;;  %v1124_v24 = vpop.f32.mrb[8].mxu1  ;;  %v1658_v0 = vadd.f32 %v1100_v21, %v1583_v39  ;;  %v1023_v18 = vmul.f32 -1.442695, %v1653_v57 }
 0x101   : > { %v468_v25 = vpop.f32.mrb[9].mxu0  ;;  %v1212_v26 = vpop.eup %1211  ;;  %1231 = vrcp.f32 %v684_v20  ;;  %v683_v27 = vadd.f32 1.0, %v1210_v22  ;;  %v1664_v9 = vadd.f32 %v1124_v24, %v1583_v39 }
 0x102   : > { %v548_v28 = vpop.f32.mrb[9].mxu1  ;;  %v1214_v29 = vpop.eup %1213  ;;  %1233 = vrcp.f32 %v700_v23  ;;  %v699_v30 = vadd.f32 1.0, %v1212_v26  ;;  %v1668_v13 = vadd.f32 %v1583_v39, %v468_v25  ;;  %v1010_v24 = vmul.f32 -1.442695, %v1658_v0 }
 0x103   : > { %v1216_v31 = vpop.eup %1215  ;;  %1235 = vrcp.f32 %v683_v27  ;;  %v686_v32 = vadd.f32 1.0, %v1214_v29  ;;  %v1103_v33 = vpop.f32.mrb[10].mxu0  ;;  %v1675_v19 = vadd.f32 %v1583_v39, %v548_v28 }
 0x104   : > { %v1218_v34 = vpop.eup %1217  ;;  %1237 = vrcp.f32 %v699_v30  ;;  %v702_v35 = vadd.f32 1.0, %v1216_v31  ;;  %v1127_v36 = vpop.f32.mrb[10].mxu1  ;;  %v1684_v25 = vadd.f32 %v1103_v33, %v1583_v39  ;;  %v1009_v31 = vmul.f32 -1.442695, %v1668_v13 }
 0x105   : > { %v1637_v37 = vpop.f32.mrb[11].mxu0  ;;  %v1220_v38 = vpop.eup %1219  ;;  %1239 = vrcp.f32 %v686_v32  ;;  %v685_v40 = vadd.f32 1.0, %v1218_v34  ;;  %v1695_v28 = vadd.f32 %v1127_v36, %v1583_v39  ;;  %v1025_v34 = vmul.f32 -1.442695, %v1675_v19 }
 0x106   : > { %v1640_v41 = vpop.f32.mrb[11].mxu1  ;;  %v1222_v44 = vpop.eup %1221  ;;  %1241 = vrcp.f32 %v702_v35  ;;  %v701_v45 = vadd.f32 1.0, %v1220_v38  ;;  %v1702_v32 = vadd.f32 %v1583_v39, %v1637_v37  ;;  %v1012_v37 = vmul.f32 -1.442695, %v1684_v25 }
 0x107   : > { %v1224_v49 = vpop.eup %1223  ;;  %1243 = vrcp.f32 %v685_v40  ;;  %v688_v50 = vadd.f32 1.0, %v1222_v44  ;;  %v1106_v52 = vpop.f32.mrb[12].mxu0  ;;  %v1709_v35 = vadd.f32 %v1583_v39, %v1640_v41  ;;  %v1028_v41 = vmul.f32 -1.442695, %v1695_v28 }
 0x108   : > { %v1226_v53 = vpop.eup %1225  ;;  %1245 = vrcp.f32 %v701_v45  ;;  %v704_v56 = vadd.f32 1.0, %v1224_v49  ;;  %v1130_v60 = vpop.f32.mrb[12].mxu1  ;;  %v1715_v38 = vadd.f32 %v1106_v52, %v1583_v39  ;;  %v1011_v49 = vmul.f32 -1.442695, %v1702_v32 }
 0x109   : > { %v1655_v61 = vpop.f32.mrb[13].mxu0  ;;  %v1228_v62 = vpop.eup %1227  ;;  %1247 = vrcp.f32 %v688_v50  ;;  %v687_v63 = vadd.f32 1.0, %v1226_v53  ;;  %v1721_v44 = vadd.f32 %v1130_v60, %v1583_v39 }
 0x10a   : > { %v1660_v1 = vpop.f32.mrb[13].mxu1  ;;  %v1230_v4 = vpop.eup %1229  ;;  %1249 = vrcp.f32 %v704_v56  ;;  %v703_v5 = vadd.f32 1.0, %v1228_v62 }
 0x10b   : > { %v1232_v10 = vpop.eup %1231  ;;  %1251 = vrcp.f32 %v687_v63  ;;  %v690_v11 = vadd.f32 1.0, %v1230_v4  ;;  %v1670_v15 = vpop.f32.mrb[14].mxu0 }
 0x10c   : > { %v1234_v16 = vpop.eup %1233  ;;  %v780_v17 = vmul.f32 %v1232_v10, %v1586_v42  ;;  %1253 = vrcp.f32 %v703_v5  ;;  %v1677_v20 = vpop.f32.mrb[14].mxu1 }
 0x10d   : > { %v1679_v21 = vpop.f32.mrb[15].mxu0  ;;  %v1236_v22 = vpop.eup %1235  ;;  %v796_v23 = vmul.f32 %v1234_v16, %v1589_v43  ;;  %1255 = vrcp.f32 %v690_v11  ;;  %v1026_v43 = vmul.f32 -1.442695, %v1664_v9 }
 0x10e   : > { %v1686_v42 = vpop.f32.mrb[15].mxu1  ;;  %v1238_v26 = vpop.eup %1237  ;;  %812 = vst [vmem:[%s1689_s28 + $0x8] sm:$0xff] %v780_v17  ;;  %v779_v27 = vmul.f32 %v1236_v22, %v1592_v46  ;;  %1257 = vpow2.f32 %v1024_v8 }
 0x10f   : > { %v1240_v29 = vpop.eup %1239  ;;  %828 = vst [vmem:[%s1689_s28 + $0x88] sm:$0xff] %v796_v23  ;;  %v795_v30 = vmul.f32 %v1238_v26, %v1595_v47  ;;  %1259 = vpow2.f32 %v1007_v12 }
 0x110   : > { %v1242_v46 = vpop.eup %1241  ;;  %811 = vst [vmem:[%s1689_s28] sm:$0xff] %v779_v27  ;;  %v782_v33 = vmul.f32 %v1240_v29, %v1602_v54  ;;  %1261 = vpow2.f32 %v1023_v18  ;;  %v1743_v29 = vadd.f32 %v1583_v39, %v1655_v61  ;;  %v1755_v61 = vadd.f32 %v1677_v20, %v1583_v39 }
 0x111   : > { %v1244_v47 = vpop.eup %1243  ;;  %827 = vst [vmem:[%s1689_s28 + $0x80] sm:$0xff] %v795_v30  ;;  %v798_v36 = vmul.f32 %v1242_v46, %v1605_v55  ;;  %1263 = vpow2.f32 %v1010_v24  ;;  %v1747_v46 = vadd.f32 %v1583_v39, %v1660_v1  ;;  %v1765_v20 = vadd.f32 %v1583_v39, %v1686_v42 }
 0x112   : > { %v1246_v54 = vpop.eup %1245  ;;  %814 = vst [vmem:[%s1689_s28 + $0x18] sm:$0xff] %v782_v33  ;;  %v781_v40 = vmul.f32 %v1244_v47, %v1608_v58  ;;  %1265 = vpow2.f32 %v1026_v43  ;;  %v1027_v58 = vmul.f32 -1.442695, %v1709_v35  ;;  %v1751_v47 = vadd.f32 %v1670_v15, %v1583_v39 }
 0x113   : > { %v1248_v45 = vpop.eup %1247  ;;  %830 = vst [vmem:[%s1689_s28 + $0x98] sm:$0xff] %v798_v36  ;;  %v797_v55 = vmul.f32 %v1246_v54, %v1611_v59  ;;  %1267 = vpow2.f32 %v1009_v31  ;;  %v1014_v59 = vmul.f32 -1.442695, %v1715_v38  ;;  %v1013_v1 = vmul.f32 -1.442695, %v1743_v29 }
 0x114   : > { %v1250_v50 = vpop.eup %1249  ;;  %813 = vst [vmem:[%s1689_s28 + $0x10] sm:$0xff] %v781_v40  ;;  %v784_v52 = vmul.f32 %v1248_v45, %v1618_v2  ;;  %1269 = vpow2.f32 %v1025_v34  ;;  %v1030_v2 = vmul.f32 -1.442695, %v1721_v44 }
 0x115   : > { %v1252_v53 = vpop.eup %1251  ;;  %829 = vst [vmem:[%s1689_s28 + $0x90] sm:$0xff] %v797_v55  ;;  %v800_v56 = vmul.f32 %v1250_v50, %v1621_v3  ;;  %1271 = vpow2.f32 %v1012_v37  ;;  %v1029_v55 = vmul.f32 -1.442695, %v1747_v46 }
 0x116   : > { %v1254_v60 = vpop.eup %1253  ;;  %816 = vst [vmem:[%s1689_s28 + $0x28] sm:$0xff] %v784_v52  ;;  %v783_v62 = vmul.f32 %v1252_v53, %v1624_v6  ;;  %1273 = vpow2.f32 %v1028_v41  ;;  %v1760_v41 = vadd.f32 %v1583_v39, %v1679_v21  ;;  %v1016_v52 = vmul.f32 -1.442695, %v1751_v47 }
 0x117   : > { %v1256_v63 = vpop.eup %1255  ;;  %832 = vst [vmem:[%s1689_s28 + $0xa8] sm:$0xff] %v800_v56  ;;  %v799_v4 = vmul.f32 %v1254_v60, %v1627_v7  ;;  %1275 = vpow2.f32 %v1011_v49  ;;  %v1032_v53 = vmul.f32 -1.442695, %v1755_v61 }
 0x118   : > { %v1258_v5 = vpop.eup %1257  ;;  %815 = vst [vmem:[%s1689_s28 + $0x20] sm:$0xff] %v783_v62  ;;  %v786_v3 = vmul.f32 %v1256_v63, %v1634_v14  ;;  %1277 = vpow2.f32 %v1027_v58  ;;  %v1015_v39 = vmul.f32 -1.442695, %v1760_v41 }
 0x119   : > { %v1260_v8 = vpop.eup %1259  ;;  %831 = vst [vmem:[%s1689_s28 + $0xa0] sm:$0xff] %v799_v4  ;;  %v706_v10 = vadd.f32 1.0, %v1258_v5  ;;  %1279 = vpow2.f32 %v1014_v59 }
 0x11a   : > { %v1262_v11 = vpop.eup %1261  ;;  %818 = vst [vmem:[%s1689_s28 + $0x38] sm:$0xff] %v786_v3  ;;  %v689_v6 = vadd.f32 1.0, %v1260_v8  ;;  %1281 = vpow2.f32 %v1030_v2 }
 0x11b   : > { %v1264_v12 = vpop.eup %1263  ;;  %1283 = vrcp.f32 %v706_v10  ;;  %v705_v16 = vadd.f32 1.0, %v1262_v11 }
 0x11c   : > { %v1266_v17 = vpop.eup %1265  ;;  %1285 = vrcp.f32 %v689_v6  ;;  %v692_v7 = vadd.f32 1.0, %v1264_v12 }
 0x11d   : > { %v1268_v18 = vpop.eup %1267  ;;  %1287 = vrcp.f32 %v705_v16  ;;  %v708_v22 = vadd.f32 1.0, %v1266_v17 }
 0x11e   : > { %v1270_v23 = vpop.eup %1269  ;;  %1289 = vrcp.f32 %v692_v7  ;;  %v691_v14 = vadd.f32 1.0, %v1268_v18 }
 0x11f   : > { %v1272_v24 = vpop.eup %1271  ;;  %1291 = vrcp.f32 %v708_v22  ;;  %v707_v26 = vadd.f32 1.0, %v1270_v23 }
 0x120   : > { %v1274_v27 = vpop.eup %1273  ;;  %1293 = vrcp.f32 %v691_v14  ;;  %v694_v43 = vadd.f32 1.0, %v1272_v24 }
 0x121   : > { %v1276_v30 = vpop.eup %1275  ;;  %1295 = vrcp.f32 %v707_v26  ;;  %v710_v31 = vadd.f32 1.0, %v1274_v27 }
 0x122   : > { %v1278_v33 = vpop.eup %1277  ;;  %1297 = vrcp.f32 %v694_v43  ;;  %v693_v34 = vadd.f32 1.0, %v1276_v30 }
 0x123   : > { %v1280_v36 = vpop.eup %1279  ;;  %1299 = vrcp.f32 %v710_v31  ;;  %v709_v37 = vadd.f32 1.0, %v1278_v33 }
 0x124   : > { %v1282_v54 = vpop.eup %1281  ;;  %1301 = vrcp.f32 %v693_v34  ;;  %v696_v40 = vadd.f32 1.0, %v1280_v36 }
 0x125   : > { %v1284_v45 = vpop.eup %1283  ;;  %1303 = vrcp.f32 %v709_v37  ;;  %v712_v15 = vadd.f32 1.0, %v1282_v54 }
 0x126   : > { %v1286_v49 = vpop.eup %1285  ;;  %v802_v50 = vmul.f32 %v1284_v45, %v1643_v48  ;;  %1305 = vrcp.f32 %v696_v40 }
 0x127   : > { %v1288_v58 = vpop.eup %1287  ;;  %v785_v21 = vmul.f32 %v1286_v49, %v1646_v51  ;;  %1307 = vrcp.f32 %v712_v15  ;;  %v1031_v51 = vmul.f32 -1.442695, %v1765_v20 }
 0x128   : > { %v1290_v56 = vpop.eup %1289  ;;  %834 = vst [vmem:[%s1689_s28 + $0xb8] sm:$0xff] %v802_v50  ;;  %v801_v59 = vmul.f32 %v1288_v58, %v1653_v57  ;;  %1309 = vpow2.f32 %v1013_v1 }
 0x129   : > { %v1292_v48 = vpop.eup %1291  ;;  %817 = vst [vmem:[%s1689_s28 + $0x30] sm:$0xff] %v785_v21  ;;  %v788_v42 = vmul.f32 %v1290_v56, %v1658_v0  ;;  %1311 = vpow2.f32 %v1029_v55 }
 0x12a   : > { %v1294_v60 = vpop.eup %1293  ;;  %833 = vst [vmem:[%s1689_s28 + $0xb0] sm:$0xff] %v801_v59  ;;  %v804_v62 = vmul.f32 %v1292_v48, %v1664_v9  ;;  %1313 = vpow2.f32 %v1016_v52 }
 0x12b   : > { %v1296_v2 = vpop.eup %1295  ;;  %820 = vst [vmem:[%s1689_s28 + $0x48] sm:$0xff] %v788_v42  ;;  %v787_v57 = vmul.f32 %v1294_v60, %v1668_v13  ;;  %1315 = vpow2.f32 %v1032_v53 }
 0x12c   : > { %v1298_v63 = vpop.eup %1297  ;;  %836 = vst [vmem:[%s1689_s28 + $0xc8] sm:$0xff] %v804_v62  ;;  %v803_v0 = vmul.f32 %v1296_v2, %v1675_v19  ;;  %1317 = vpow2.f32 %v1015_v39 }
 0x12d   : > { %v1300_v4 = vpop.eup %1299  ;;  %819 = vst [vmem:[%s1689_s28 + $0x40] sm:$0xff] %v787_v57  ;;  %v790_v5 = vmul.f32 %v1298_v63, %v1684_v25  ;;  %1319 = vpow2.f32 %v1031_v51 }
 0x12e   : > { %v1302_v9 = vpop.eup %1301  ;;  %835 = vst [vmem:[%s1689_s28 + $0xc0] sm:$0xff] %v803_v0  ;;  %v806_v3 = vmul.f32 %v1300_v4, %v1695_v28 }
 0x12f   : > { %v1304_v13 = vpop.eup %1303  ;;  %822 = vst [vmem:[%s1689_s28 + $0x58] sm:$0xff] %v790_v5  ;;  %v789_v8 = vmul.f32 %v1302_v9, %v1702_v32 }
 0x130   : > { %v1306_v10 = vpop.eup %1305  ;;  %838 = vst [vmem:[%s1689_s28 + $0xd8] sm:$0xff] %v806_v3  ;;  %v805_v19 = vmul.f32 %v1304_v13, %v1709_v35 }
 0x131   : > { %v1308_v11 = vpop.eup %1307  ;;  %821 = vst [vmem:[%s1689_s28 + $0x50] sm:$0xff] %v789_v8  ;;  %v792_v6 = vmul.f32 %v1306_v10, %v1715_v38 }
 0x132   : > { %v1310_v25 = vpop.eup %1309  ;;  %837 = vst [vmem:[%s1689_s28 + $0xd0] sm:$0xff] %v805_v19  ;;  %v808_v12 = vmul.f32 %v1308_v11, %v1721_v44 }
 0x133   : > { %v1312_v16 = vpop.eup %1311  ;;  %824 = vst [vmem:[%s1689_s28 + $0x68] sm:$0xff] %v792_v6  ;;  %v695_v28 = vadd.f32 1.0, %v1310_v25 }
 0x134   : > { %v1314_v17 = vpop.eup %1313  ;;  %840 = vst [vmem:[%s1689_s28 + $0xe8] sm:$0xff] %v808_v12  ;;  %v711_v7 = vadd.f32 1.0, %v1312_v16 }
 0x135   : > { %v1316_v18 = vpop.eup %1315  ;;  %1321 = vrcp.f32 %v695_v28  ;;  %v698_v32 = vadd.f32 1.0, %v1314_v17 }
 0x136   : > { %v1318_v22 = vpop.eup %1317  ;;  %1323 = vrcp.f32 %v711_v7  ;;  %v714_v35 = vadd.f32 1.0, %v1316_v18 }
 0x137   : > { %v1320_v38 = vpop.eup %1319  ;;  %1325 = vrcp.f32 %v698_v32  ;;  %v697_v23 = vadd.f32 1.0, %v1318_v22 }
 0x138   : > { %1327 = vrcp.f32 %v714_v35  ;;  %v713_v44 = vadd.f32 1.0, %v1320_v38 }
 0x139   : > { %1329 = vrcp.f32 %v697_v23 }
 0x13a   : > { %1331 = vrcp.f32 %v713_v44 }
 0x13f   : > { %v1322_v14 = vpop.eup %1321 }
 0x140   : > { %v1324_v24 = vpop.eup %1323  ;;  %v791_v26 = vmul.f32 %v1322_v14, %v1743_v29 }
 0x141   : > { %v1326_v27 = vpop.eup %1325  ;;  %v807_v43 = vmul.f32 %v1324_v24, %v1747_v46 }
 0x142   : > { %v1328_v30 = vpop.eup %1327  ;;  %823 = vst [vmem:[%s1689_s28 + $0x60] sm:$0xff] %v791_v26  ;;  %v794_v31 = vmul.f32 %v1326_v27, %v1751_v47 }
 0x143   : > { %v1330_v33 = vpop.eup %1329  ;;  %839 = vst [vmem:[%s1689_s28 + $0xe0] sm:$0xff] %v807_v43  ;;  %v810_v34 = vmul.f32 %v1328_v30, %v1755_v61 }
 0x144   : > { %v1332_v36 = vpop.eup %1331  ;;  %826 = vst [vmem:[%s1689_s28 + $0x78] sm:$0xff] %v794_v31  ;;  %v793_v29 = vmul.f32 %v1330_v33, %v1760_v41 }
 0x145   : > { %842 = vst [vmem:[%s1689_s28 + $0xf8] sm:$0xff] %v810_v34  ;;  %v809_v46 = vmul.f32 %v1332_v36, %v1765_v20 }
 0x146   : > { %825 = vst [vmem:[%s1689_s28 + $0x70] sm:$0xff] %v793_v29 }
 0x147   : > { %841 = vst [vmem:[%s1689_s28 + $0xf0] sm:$0xff] %v809_v46 }
 0x148   : > { %1346 = shalt.err (!%p1343_p5)
}
 0x149   : > { %s1347_s11 = scalar_lea.hbm %s1810_s15, 4096  ;;  %s1351_s21 = scalar_lea.hbm %s1869_s3, 8192 }
 0x14a   : > { %p1348_p6 = scmp.ne.s32.totalorder %s1810_s15, %s1347_s11  ;;  %p1352_p10 = scmp.lt.u32.totalorder %s1810_s15, %s1869_s3 }
 0x14b   : > { %p1353_p11 = scmp.lt.u32.totalorder %s1351_s21, %s1347_s11  ;;  %p1355_p13 = scmp.lt.u32.totalorder %s1347_s11, %s1810_s15 }
 0x14c   : > { %p1349_p7 = pnand %p1348_p6, %p1476_p4 }
 0x14d   : > { %p1354_p12 = por %p1353_p11, %p1352_p10 }
 0x14e   : > { %p1350_p9 = pneg %p1349_p7 }
 0x14f   : > { %p1356_p0 = por %p1355_p13, %p1354_p12 }
 0x151   : > { %p1357_p1 = pnand %p1356_p0, %p1350_p9 }
 0x153   : > { %1360 = shalt.err (!%p1357_p1)
}
 0x154   : > { %s1414_s27 = smov 128   ;;  %s1415_s28 = smov 8  }
 0x155   : > { %1148 = dma.vmem_to_hbm [thread:$0]  (%p1476_p4), %s1812_s30, 4096, %s1810_s15, %s1820_s6, %s1414_s27, %s1414_s27, %s1415_s28  }
 0x156 PF: > { %p1154_p2 = scmp.ge.s32.totalorder %s1411_s17, 2  ;;  %s873_s29 = sand.u32 1, %s1391_s12  }
 0x157   : > { %s874_s4 = scalar_lea.sflag [#allocation3], %s873_s29 }
 0x158   : > { %p1151_p3 = pnand %p1154_p2, %p1483_p8 }
 0x15a   : > { %1386 = dma.done.wait (!%p1151_p3), %s874_s4, 4096  }
 0x15b   : > { %1388 = vsyncadd (!%p1151_p3), %s874_s4, 4294963200  ;;  %s16_s17 = sadd.s32 1, %s1411_s17   ;;  %s1872_s12 = smov %s1395_s13 }
 0x15c   : > { %p13_p5 = scmp.ge.s32.totalorder %s16_s17, 4   ;;  %s1873_s13 = smov %s1399_s14 }
 0x15d   : > { %s1874_s14 = smov %s1489_s25  ;;  %s1875_s15 = smov %s1407_s16 }
 0x15e   : > { %s1876_s16 = smov %s1878_s20  ;;  %15 = sbr.rel (!%p13_p5) target bundleno = 4 (0x4), region = 73 }
 0x165   :  { %879 = vsyncpa [#allocation3], 1 }
 0x166   :  { %881 = vsyncpa [#allocation3 + $0x1], 1 }

</bundles_post_ra>
